<compile_context>
chip_gen: v5e
topology: v5e:2x2
jax: 0.10.0
libtpu: 0.0.40
codegen_flags: <defaults>
</compile_context>

<pallas_src>
import jax
import jax.numpy as jnp
from jax.experimental import pallas as pl
from jax.experimental.pallas import tpu as pltpu

_LANE = 128
_SUBLANE = 8


def _round_up(n, m):
    return ((n + m - 1) // m) * m


def _pad_cols(a, n):
    pad = n - a.shape[-1]
    if pad == 0:
        return a
    return jnp.pad(a, [(0, 0)] * (a.ndim - 1) + [(0, pad)])


def _pad_rows(a, n):
    pad = n - a.shape[0]
    if pad == 0:
        return a
    return jnp.pad(a, [(0, pad)] + [(0, 0)] * (a.ndim - 1))


def _difficulty_net_kernel(x_ref, w1_ref, b1_ref, w2_ref, b2_ref, w3_ref, b3_ref,
                           out_ref):
    # Layer 1: Linear + ReLU (MXU matmul, f32 accumulation; bias broadcasts over batch)
    h1 = jnp.dot(x_ref[...], w1_ref[...], preferred_element_type=jnp.float32)
    h1 = jnp.maximum(h1 + b1_ref[...], 0.0)

    # Layer 2: Linear + ReLU
    h2 = jnp.dot(h1, w2_ref[...], preferred_element_type=jnp.float32)
    h2 = jnp.maximum(h2 + b2_ref[...], 0.0)

    # Layer 3: Linear + Sigmoid (only over the real output columns; logistic -> EUP)
    o = jnp.dot(h2, w3_ref[...], preferred_element_type=jnp.float32) + b3_ref[...]
    out_ref[...] = jax.nn.sigmoid(o).astype(out_ref.dtype)


def difficulty_net_forward(x, w1, b1, w2, b2, w3, b3, *, block_batch=4096):
    """x: (B, in). w_i pre-transposed: (in_i, out_i). b_i: (1, out_i)."""
    B, in_dim = x.shape
    h1_dim = w1.shape[1]
    h2_dim = w2.shape[1]
    out_dim = w3.shape[1]

    # Pad only the *hidden* widths to multiples of 128 (cheap, weight-side-only zero
    # padding) so h1/h2 stay lane-dense.  The output width is NOT padded: the (tb, out_dim)
    # store is still a contiguous HBM region per block and avoids 8x extra writeback.
    h1_p = _round_up(h1_dim, _LANE)
    h2_p = _round_up(h2_dim, _LANE)

    w1p = _pad_cols(w1, h1_p)
    b1p = _pad_cols(b1, h1_p)
    w2p = _pad_cols(_pad_rows(w2, h1_p), h2_p)
    b2p = _pad_cols(b2, h2_p)
    w3p = _pad_rows(w3, h2_p)       # columns stay = out_dim
    b3p = b3

    # Batch tiling: big tiles amortize the ~0.35us/step pipeline overhead.  tb is always a
    # multiple of 8 (sublane constraint); the ragged last block is masked by Pallas, so no
    # row padding / post-slice is needed.
    tb = max(_SUBLANE, min(_round_up(block_batch, _SUBLANE), _round_up(B, _SUBLANE)))
    n_blocks = pl.cdiv(B, tb)

    # VMEM budget: double-buffered x/out tiles + (double-buffered) weights + h1/h2/o
    # temporaries.  Clamp to stay comfortably inside v7x's 64 MiB physical VMEM while
    # lifting v5e's 16 MiB scoped default.
    itemsize = jnp.dtype(x.dtype).itemsize
    weights_bytes = sum(int(a.size) * jnp.dtype(a.dtype).itemsize
                        for a in (w1p, b1p, w2p, b2p, w3p, b3p))
    vmem_estimate = (2 * tb * in_dim * itemsize          # x double buffer
                     + 2 * tb * out_dim * itemsize       # out double buffer
                     + 2 * weights_bytes                 # weight blocks
                     + 4 * tb * max(h1_p, h2_p) * 4)     # h1/h2/o f32 temporaries + slack
    vmem_limit = int(min(max(2 * vmem_estimate, 32 * 1024 * 1024), 48 * 1024 * 1024))

    # Weights/biases: constant block index -> loaded once, VMEM-resident across steps.
    const = lambda arr: pl.BlockSpec(arr.shape, lambda i: (0, 0))

    out = pl.pallas_call(
        _difficulty_net_kernel,
        out_shape=jax.ShapeDtypeStruct((B, out_dim), x.dtype),
        grid=(n_blocks,),
        in_specs=[
            pl.BlockSpec((tb, in_dim), lambda i: (i, 0)),   # x streamed per batch tile
            const(w1p), const(b1p),
            const(w2p), const(b2p),
            const(w3p), const(b3p),
        ],
        out_specs=pl.BlockSpec((tb, out_dim), lambda i: (i, 0)),
        compiler_params=pltpu.CompilerParams(
            # batch tiles are independent (shards across v7x's 2 TCs; no-op on v5e/v6e)
            dimension_semantics=("parallel",),
            vmem_limit_bytes=vmem_limit,
        ),
    )(x, w1p, b1p, w2p, b2p, w3p, b3p)

    return out


def init_linear_params(key, fan_in, fan_out, dtype=jnp.float32):
    """Deterministic PyTorch-style nn.Linear init (uniform +-1/sqrt(fan_in))."""
    kw, kb = jax.random.split(key)
    bound = 1.0 / (fan_in ** 0.5)
    # stored already transposed: (in, out)
    w = jax.random.uniform(kw, (fan_in, fan_out), dtype, minval=-bound, maxval=bound)
    b = jax.random.uniform(kb, (1, fan_out), dtype, minval=-bound, maxval=bound)
    return w, b


if __name__ == "__main__":
    # Small shapes consistent with the module's forward.  batch=24 with block_batch=16
    # exercises a 2-step batch grid including a ragged (masked) last block.
    batch, in_dim, hidden1, hidden2, out_dim = 24, 32, 64, 64, 16

    key = jax.random.PRNGKey(0)
    kx, k1, k2, k3 = jax.random.split(key, 4)

    x = jax.random.normal(kx, (batch, in_dim), jnp.float32)
    w1, b1 = init_linear_params(k1, in_dim, hidden1)
    w2, b2 = init_linear_params(k2, hidden1, hidden2)
    w3, b3 = init_linear_params(k3, hidden2, out_dim)

    out = difficulty_net_forward(x, w1, b1, w2, b2, w3, b3, block_batch=16)
    out = jax.block_until_ready(out)

    # reference check in plain JAX (same semantics as the PyTorch module)
    ref = jnp.maximum(x @ w1 + b1, 0.0)
    ref = jnp.maximum(ref @ w2 + b2, 0.0)
    ref = jax.nn.sigmoid(ref @ w3 + b3)
    assert out.shape == (batch, out_dim)
    assert jnp.allclose(out, ref, atol=1e-5, rtol=1e-5)

    print("KERNEL_OK")
</pallas_src>

<mosaic_0001>
module attributes {stable_mosaic.version = 11 : i64} {
  func.func @_difficulty_net_kernel(%arg0: i32, %arg1: memref<16x32xf32, #tpu.memory_space<vmem>>, %arg2: memref<32x128xf32, #tpu.memory_space<vmem>>, %arg3: memref<1x128xf32, #tpu.memory_space<vmem>>, %arg4: memref<128x128xf32, #tpu.memory_space<vmem>>, %arg5: memref<1x128xf32, #tpu.memory_space<vmem>>, %arg6: memref<128x16xf32, #tpu.memory_space<vmem>>, %arg7: memref<1x16xf32, #tpu.memory_space<vmem>>, %arg8: memref<16x16xf32, #tpu.memory_space<vmem>>) attributes {dimension_semantics = [#tpu.dimension_semantics<parallel>], iteration_bounds = array<i64: 2>, scalar_prefetch = 0 : i64, scratch_operands = 0 : i64, tpu.core_type = #tpu.core_type<tc>, window_params = [{transform_indices = @transform_0, window_bounds = array<i64: 16, 32>}, {pipeline_mode = #tpu.pipeline_mode<synchronous>, transform_indices = @transform_1, window_bounds = array<i64: 32, 128>}, {pipeline_mode = #tpu.pipeline_mode<synchronous>, transform_indices = @transform_2, window_bounds = array<i64: 1, 128>}, {pipeline_mode = #tpu.pipeline_mode<synchronous>, transform_indices = @transform_3, window_bounds = array<i64: 128, 128>}, {pipeline_mode = #tpu.pipeline_mode<synchronous>, transform_indices = @transform_4, window_bounds = array<i64: 1, 128>}, {pipeline_mode = #tpu.pipeline_mode<synchronous>, transform_indices = @transform_5, window_bounds = array<i64: 128, 16>}, {pipeline_mode = #tpu.pipeline_mode<synchronous>, transform_indices = @transform_6, window_bounds = array<i64: 1, 16>}, {transform_indices = @transform_7, window_bounds = array<i64: 16, 16>}]} {
    %c0 = arith.constant 0 : index
    %c0_0 = arith.constant 0 : index
    %0 = vector.load %arg1[%c0, %c0_0] : memref<16x32xf32, #tpu.memory_space<vmem>>, vector<16x32xf32>
    %c0_1 = arith.constant 0 : index
    %c0_2 = arith.constant 0 : index
    %1 = vector.load %arg2[%c0_1, %c0_2] : memref<32x128xf32, #tpu.memory_space<vmem>>, vector<32x128xf32>
    %cst = arith.constant dense<0.000000e+00> : vector<16x128xf32>
    %2 = tpu.matmul %0, %1, %cst {dimension_numbers = #tpu.dot_dimension_numbers<[1], [0], [0], [1], [0, 0, 1, 1], [], []>} : vector<16x32xf32>, vector<32x128xf32>, vector<16x128xf32> -> vector<16x128xf32>
    %c0_3 = arith.constant 0 : index
    %c0_4 = arith.constant 0 : index
    %3 = vector.load %arg3[%c0_3, %c0_4] : memref<1x128xf32, #tpu.memory_space<vmem>>, vector<1x128xf32>
    %4 = vector.broadcast %3 : vector<1x128xf32> to vector<16x128xf32>
    %5 = arith.addf %2, %4 : vector<16x128xf32>
    %cst_5 = arith.constant 0.000000e+00 : f32
    %6 = vector.broadcast %cst_5 : f32 to vector<16x128xf32>
    %7 = arith.maximumf %5, %6 : vector<16x128xf32>
    %c0_6 = arith.constant 0 : index
    %c0_7 = arith.constant 0 : index
    %8 = vector.load %arg4[%c0_6, %c0_7] : memref<128x128xf32, #tpu.memory_space<vmem>>, vector<128x128xf32>
    %cst_8 = arith.constant dense<0.000000e+00> : vector<16x128xf32>
    %9 = tpu.matmul %7, %8, %cst_8 {dimension_numbers = #tpu.dot_dimension_numbers<[1], [0], [0], [1], [0, 0, 1, 1], [], []>} : vector<16x128xf32>, vector<128x128xf32>, vector<16x128xf32> -> vector<16x128xf32>
    %c0_9 = arith.constant 0 : index
    %c0_10 = arith.constant 0 : index
    %10 = vector.load %arg5[%c0_9, %c0_10] : memref<1x128xf32, #tpu.memory_space<vmem>>, vector<1x128xf32>
    %11 = vector.broadcast %10 : vector<1x128xf32> to vector<16x128xf32>
    %12 = arith.addf %9, %11 : vector<16x128xf32>
    %cst_11 = arith.constant 0.000000e+00 : f32
    %13 = vector.broadcast %cst_11 : f32 to vector<16x128xf32>
    %14 = arith.maximumf %12, %13 : vector<16x128xf32>
    %c0_12 = arith.constant 0 : index
    %c0_13 = arith.constant 0 : index
    %15 = vector.load %arg6[%c0_12, %c0_13] : memref<128x16xf32, #tpu.memory_space<vmem>>, vector<128x16xf32>
    %cst_14 = arith.constant dense<0.000000e+00> : vector<16x16xf32>
    %16 = tpu.matmul %14, %15, %cst_14 {dimension_numbers = #tpu.dot_dimension_numbers<[1], [0], [0], [1], [0, 0, 1, 1], [], []>} : vector<16x128xf32>, vector<128x16xf32>, vector<16x16xf32> -> vector<16x16xf32>
    %c0_15 = arith.constant 0 : index
    %c0_16 = arith.constant 0 : index
    %17 = vector.load %arg7[%c0_15, %c0_16] : memref<1x16xf32, #tpu.memory_space<vmem>>, vector<1x16xf32>
    %18 = vector.broadcast %17 : vector<1x16xf32> to vector<16x16xf32>
    %19 = arith.addf %16, %18 : vector<16x16xf32>
    %20 = arith.negf %19 : vector<16x16xf32>
    %21 = math.exp %20 : vector<16x16xf32>
    %cst_17 = arith.constant 1.000000e+00 : f32
    %22 = vector.broadcast %cst_17 : f32 to vector<16x16xf32>
    %23 = arith.addf %22, %21 : vector<16x16xf32>
    %24 = arith.divf %22, %23 : vector<16x16xf32>
    %c0_18 = arith.constant 0 : index
    %c0_19 = arith.constant 0 : index
    %25 = vector.load %arg8[%c0_18, %c0_19] : memref<16x16xf32, #tpu.memory_space<vmem>>, vector<16x16xf32>
    tpu.vector_store %arg8[%c0_18, %c0_19], %24 {strides = array<i32>} : memref<16x16xf32, #tpu.memory_space<vmem>>, vector<16x16xf32>,
    return
  }
  func.func @transform_0(%arg0: i32) -> (i32, i32) {
    %c0_i32 = arith.constant 0 : i32
    %c0_i32_0 = arith.constant 0 : i32
    return %arg0, %c0_i32 : i32, i32
  }
  func.func @transform_1(%arg0: i32) -> (i32, i32) {
    %c0_i32 = arith.constant 0 : i32
    %c0_i32_0 = arith.constant 0 : i32
    %c0_i32_1 = arith.constant 0 : i32
    return %c0_i32, %c0_i32_0 : i32, i32
  }
  func.func @transform_2(%arg0: i32) -> (i32, i32) {
    %c0_i32 = arith.constant 0 : i32
    %c0_i32_0 = arith.constant 0 : i32
    %c0_i32_1 = arith.constant 0 : i32
    return %c0_i32, %c0_i32_0 : i32, i32
  }
  func.func @transform_3(%arg0: i32) -> (i32, i32) {
    %c0_i32 = arith.constant 0 : i32
    %c0_i32_0 = arith.constant 0 : i32
    %c0_i32_1 = arith.constant 0 : i32
    return %c0_i32, %c0_i32_0 : i32, i32
  }
  func.func @transform_4(%arg0: i32) -> (i32, i32) {
    %c0_i32 = arith.constant 0 : i32
    %c0_i32_0 = arith.constant 0 : i32
    %c0_i32_1 = arith.constant 0 : i32
    return %c0_i32, %c0_i32_0 : i32, i32
  }
  func.func @transform_5(%arg0: i32) -> (i32, i32) {
    %c0_i32 = arith.constant 0 : i32
    %c0_i32_0 = arith.constant 0 : i32
    %c0_i32_1 = arith.constant 0 : i32
    return %c0_i32, %c0_i32_0 : i32, i32
  }
  func.func @transform_6(%arg0: i32) -> (i32, i32) {
    %c0_i32 = arith.constant 0 : i32
    %c0_i32_0 = arith.constant 0 : i32
    %c0_i32_1 = arith.constant 0 : i32
    return %c0_i32, %c0_i32_0 : i32, i32
  }
  func.func @transform_7(%arg0: i32) -> (i32, i32) {
    %c0_i32 = arith.constant 0 : i32
    %c0_i32_0 = arith.constant 0 : i32
    return %arg0, %c0_i32 : i32, i32
  }
}

</mosaic_0001>

<bundles_post_ra>
// kernel: tpu_custom_call.1
= control target key start
LH: loop header
LB: loop body
LE: loop exit
PB: predicated region body
PF: predicated region fallthrough
CT: control target
= control target key end

     0   :  { %12 = vsyncpa [#allocation3], 0  ;;  %s1426_s0 = inlined_call_operand.hbm [shape: f32[24,32], index: 0, kind: input, shape index: {}]   ;;  %s1427_s1 = inlined_call_operand.hbm [shape: f32[32,128], index: 1, kind: input, shape index: {}]   ;;  %s1428_s2 = inlined_call_operand.vmem [shape: f32[1,128], index: 2, kind: input, shape index: {}]   ;;  %s1429_s3 = inlined_call_operand.vmem [shape: f32[128,128], index: 3, kind: input, shape index: {}]   ;;  %s1430_s4 = inlined_call_operand.vmem [shape: f32[1,128], index: 4, kind: input, shape index: {}]   ;;  %s1431_s5 = inlined_call_operand.vmem [shape: f32[128,16], index: 5, kind: input, shape index: {}]   ;;  %s1432_s6 = inlined_call_operand.vmem [shape: f32[1,16], index: 6, kind: input, shape index: {}]   ;;  %s1433_s7 = inlined_call_operand.vmem [shape: f32[24,16], index: 7, kind: output, shape index: {}]  }
   0x1   :  { %14 = vsyncpa [#allocation3 + $0x1], 0 }
   0x2   :  { %15 = vsyncpa [#allocation5], 0  ;;  %s1139_s24 = smov 0   ;;  %s1141_s25 = smov 0  }
   0x3   :  { %s1143_s26 = smov 0   ;;  %s1145_s27 = smov 0  }
   0x4 LB: > { %s1158_s28 = sadd.s32 4294967295, %s1059_s27   ;;  %s1161_s29 = sadd.s32 1, %s1059_s27   ;;  %s1059_s27 = sphi %s1145_s27, %s1447_s27   ;;  %s1055_s26 = sphi %s1143_s26, %s1446_s26   ;;  %s1051_s25 = sphi %s1141_s25, %s1445_s25   ;;  %s1047_s24 = sphi %s1139_s24, %s1444_s24  }
   0x5   : > { %s25_s30 = ssub.s32 %s1059_s27, %s1161_s29  ;;  %s28_s8 = sadd.s32 1, %s1055_s26 }
   0x6   : > { %p26_p0 = scmp.eq.s32.totalorder %s25_s30, 0  ;;  %p35_p1 = scmp.ne.s32.totalorder %s1055_s26, %s1051_s25 }
   0x7   : > { %p36_p2 = scmp.eq.s32.totalorder %s1059_s27, 0  ;;  %p41_p3 = scmp.ne.s32.totalorder %s1051_s25, %s1047_s24 }
   0x8   : > { %s1171_s9 = scalar_select %p26_p0, %s1055_s26, %s28_s8  }
   0x9   : > { %p1173_p4 = por %p36_p2, %p35_p1  ;;  %p1435_p5 = scmp.eq.s32.totalorder %s1158_s28, 0 }
   0xa   : > { %p191_p6 = scmp.eq.s32.totalorder %s1158_s28, 1  ;;  %p742_p7 = scmp.ge.s32.totalorder %s1059_s27, 1 }
   0xb   : > { %p1182_p8 = por %p1435_p5, %p41_p3  ;;  %p204_p9 = scmp.lt.s32.totalorder %s1059_s27, 3 }
   0xc   : > { %p1187_p10 = por %p191_p6, %p35_p1  ;;  %s215_s16 = sshll.u32 %s1427_s1, 4  ;;  %s216_s16 = int_to_ptr.hbm [resolvable:$true] %s215_s16 }
   0xd   : > { %p1191_p11 = pnand %p742_p7, %p204_p9  ;;  %s1093_s17 = smov [#allocation4]  }
   0xe   : > { %s217_s18 = sshll.u32 %s1093_s17, 4  ;;  %s1094_s19 = smov 128   ;;  %s218_s18 = int_to_ptr.vmem [resolvable:$true] %s217_s18 }
   0xf   : > { %p802_p12 = pneg %p1191_p11  ;;  %s1095_s20 = smov 8  }
  0x10   : > { %p744_p0 = scmp.ge.s32.totalorder %s1059_s27, 2 }
  0x11   : > { %p803_p13 = pnand %p802_p12, %p1435_p5 }
  0x12   : > { %242 = sbr.rel (%p744_p0) target bundleno = 60 (0x3c), region = 40 }
  0x13   : > { %805 = dma.hbm_to_vmem [thread:$0]  (!%p803_p13), %s216_s16, 512, %s218_s18, [#allocation5], %s1094_s19, %s1094_s19, %s1095_s20  }
  0x17   : > { %245 = sbr.rel (!%p1173_p4) target bundleno = 60 (0x3c), region = 44  ;;  %s246_s21 = sand.u32 (%p1173_p4), 1, %s1055_s26  }
  0x18   : > { %s746_s22 = sshll.u32 (%p1173_p4), %s1059_s27, 1  ;;  %s745_s23 = sshll.u32 (%p1173_p4), %s246_s21, 4 }
  0x19   : > { %s252_s24 = ssub.s32 (%p1173_p4), 3, %s746_s22  ;;  %s1210_s15 = scalar_lea.sflag (%p1173_p4), [#allocation3], %s246_s21 }
  0x1a   : > { %p253_p1 = scmp.lt.s32.totalorder (%p1173_p4), %s252_s24, 2  ;;  %s250_s16 = scalar_lea.vmem (%p1173_p4), [#allocation2], %s745_s23 }
  0x1c   : > { %s1449_s24 = smov (!%p253_p1, %s252_s24), 2 }
  0x1d   : > { %s747_s30 = sshll.u32 %s1449_s24, 3 }
  0x1e   : > { %s256_s8 = ssub.s32 16, %s747_s30 }
  0x1f   : > { %s257_s14 = sshll.u32 %s256_s8, 4 }
  0x20   : > { %258 = vsyncadd %s1210_s15, %s257_s14  ;;  %p1213_p2 = scmp.ne.s32.totalorder %s747_s30, 0  ;;  %s777_s17 = sshll.u32 %s1059_s27, 4 }
  0x21   : > { %s261_s20 = scalar_lea.hbm %s1426_s0, %s777_s17  ;;  %s1221_s22 = sshll.u32 %s250_s16, 4  ;;  %s266_s22 = int_to_ptr.vmem [resolvable:$true] %s1221_s22 }
  0x22   : > { %s263_s21 = sshll.u32 %s261_s20, 4  ;;  %s1434_s23 = sshll.u32 %s1449_s24, 7  ;;  %s1224_s21 = int_to_ptr.hbm [resolvable:$true] %s263_s21 }
  0x23   : > { %s950_s8 = sshra.s32 %s1224_s21, 4  ;;  %s952_s30 = sshrl.u32 %s1434_s23, 4  ;;  %s951_s8 = int_to_ptr.hbm [resolvable:$true] %s950_s8 }
  0x24   : > { %s957_s14 = scalar_lea.hbm %s951_s8, %s952_s30  ;;  %s961_s16 = scalar_lea.hbm %s1426_s0, 24 }
  0x25   : > { %p958_p3 = scmp.ne.s32.totalorder %s951_s8, %s957_s14  ;;  %p962_p7 = scmp.lt.s32.totalorder %s951_s8, %s1426_s0 }
  0x26   : > { %p963_p9 = scmp.lt.s32.totalorder %s961_s16, %s957_s14 }
  0x27   : > { %p959_p4 = pnand %p958_p3, %p1213_p2 }
  0x28   : > { %p964_p12 = por %p963_p9, %p962_p7 }
  0x29   : > { %p960_p6 = pneg %p959_p4 }
  0x2b   : > { %p965_p13 = pnand %p964_p12, %p960_p6 }
  0x2d   : > { %968 = shalt.err (!%p965_p13)
}
  0x2e   : > { %s969_s20 = sshra.s32 %s266_s22, 4  ;;  %s1096_s27 = smov [#allocation2]   ;;  %s970_s20 = int_to_ptr.vmem [resolvable:$true] %s969_s20 }
  0x2f   : > { %s976_s23 = scalar_lea.vmem %s970_s20, %s952_s30  ;;  %s980_s17 = scalar_lea.vmem %s1096_s27, 32 }
  0x30   : > { %p977_p0 = scmp.ne.s32.totalorder %s970_s20, %s976_s23  ;;  %p982_p4 = scmp.lt.s32.totalorder %s980_s17, %s976_s23 }
  0x32   : > { %p978_p1 = pnand %p977_p0, %p1213_p2 }
  0x34   : > { %p979_p3 = pneg %p978_p1 }
  0x36   : > { %p984_p5 = pnand %p982_p4, %p979_p3 }
  0x38   : > { %987 = shalt.err (!%p984_p5)
}
  0x39   : > { %s1097_s8 = smov 128   ;;  %s1098_s14 = smov 8  }
  0x3a   : > { %s1441_s16 = sshll.u32 %s1449_s24, 7 }
  0x3b   : > { %271 = dma.hbm_to_vmem [thread:$0]  (%p1213_p2), %s1224_s21, %s1441_s16, %s266_s22, %s1210_s15, %s1097_s8, %s1097_s8, %s1098_s14  }
  0x3c PF: > { %277 = sbr.rel (%p1191_p11) target bundleno = 553 (0x229), region = 48  ;;  %s279_s23 = sand.u32 (!%p1191_p11), 1, %s1051_s25  }
  0x3d   : > { %s1253_s30 = sshll.u32 (!%p1191_p11), %s279_s23, 4  ;;  %s280_s18 = scalar_lea.sflag (!%p1191_p11), [#allocation3], %s279_s23 }
  0x3e   : > { %s283_s19 = scalar_lea.vmem (!%p1191_p11), [#allocation2], %s1253_s30 }
  0x41   : > { %1038 = dma.done.wait (%p1182_p8), %s280_s18, 256  }
  0x42   : > { %1040 = vsyncadd (%p1182_p8), %s280_s18, 4294967040  ;;  %p1442_p5 = scmp.eq.s32.totalorder %s1158_s28, 0 }
  0x44   : > { %1042 = dma.done.wait (%p1442_p5), [#allocation5], 512   ;;  %p1443_p2 = pmov %p1442_p5 }
  0x45   : > { %v334_v0 = vld [vmem:[#allocation4 + $0x18] sm:$0xff]  ;;  %v333_v1 = vld [vmem:[#allocation4 + $0x10] sm:$0xff]  ;;  %v332_v2 = vld [vmem:[#allocation4 + $0x8] sm:$0xff]  ;;  %vm339_vm0 = vcmask 261120   ;;  %vm497_vm4 = vcmask 130048   ;;  %s1376_s21 = scalar_lea.vmem [#allocation6], %s1253_s30  }
  0x46   : > { %1044 = vsyncadd (%p1443_p2), [#allocation5], 4294966784  ;;  %358 = vmatpush.msra.mxu0 %v334_v0  ;;  %v386_v3 = vld [vmem:[%s1429_s3 + $0x78] sm:$0xff]  ;;  %v385_v4 = vld [vmem:[%s1429_s3 + $0x70] sm:$0xff]  ;;  %s761_s30 = sshll.u32 (%p1187_p10), %s1158_s28, 1  ;;  %s778_s20 = sshll.u32 (%p1187_p10), %s1158_s28, 4 }
  0x47   : > { %391 = vmatpush.msra.mxu1 %v386_v3  ;;  %v331_v5 = vld [vmem:[#allocation4] sm:$0xff]  ;;  %v384_v6 = vld [vmem:[%s1429_s3 + $0x68] sm:$0xff]  ;;  %781 = vmatpush.msra.mxu3 %v386_v3  ;;  %v382_v9 = vld [vmem:[%s1429_s3 + $0x58] sm:$0xff]  ;;  %s508_s27 = ssub.s32 (%p1187_p10), 3, %s761_s30  ;;  %s1389_s14 = scalar_lea.vmem (%p1187_p10), %s1433_s7, %s778_s20  }
  0x48   : > { %359 = vmatpush.msra.mxu0 %v333_v1  ;;  %v329_v7 = vld [vmem:[%s283_s19] sm:$0xff]  ;;  %v380_v11 = vld [vmem:[%s1429_s3 + $0x48] sm:$0xff]  ;;  %v378_v14 = vld [vmem:[%s1429_s3 + $0x38] sm:$0xff]  ;;  %p509_p8 = scmp.lt.s32.totalorder (%p1187_p10), %s508_s27, 2 }
  0x49   : > { %392 = vmatpush.msra.mxu1 %v385_v4  ;;  %v383_v8 = vld [vmem:[%s1429_s3 + $0x60] sm:$0xff]  ;;  %782 = vmatpush.msra.mxu3 %v385_v4  ;;  %v381_v10 = vld [vmem:[%s1429_s3 + $0x50] sm:$0xff]  ;;  %v330_v12 = vld [vmem:[%s283_s19 + $0x8] sm:$0xff] }
  0x4a   : > { %360 = vmatpush.msra.mxu0 %v332_v2  ;;  %v379_v13 = vld [vmem:[%s1429_s3 + $0x40] sm:$0xff]  ;;  %v377_v15 = vld [vmem:[%s1429_s3 + $0x30] sm:$0xff]  ;;  %v376_v16 = vld [vmem:[%s1429_s3 + $0x28] sm:$0xff] }
  0x4b   : > { %393 = vmatpush.msra.mxu1 %v384_v6  ;;  %783 = vmatpush.msra.mxu3 %v384_v6  ;;  %v375_v17 = vld [vmem:[%s1429_s3 + $0x20] sm:$0xff]  ;;  %v374_v18 = vld [vmem:[%s1429_s3 + $0x18] sm:$0xff]  ;;  %v373_v19 = vld [vmem:[%s1429_s3 + $0x10] sm:$0xff] }
  0x4c   : > { %361 = vmatpush.msra.mxu0 %v331_v5  ;;  %v372_v20 = vld [vmem:[%s1429_s3 + $0x8] sm:$0xff]  ;;  %v371_v21 = vld [vmem:[%s1429_s3] sm:$0xff]  ;;  %v431_v22 = vld [vmem:[%s1431_s5 + $0x78] sm:$0xff] }
  0x4d   : > { %756 = vmatmul.msk.f32.vlgmr.msra.gmra.mxu0 %vm339_vm0, %v329_v7  ;;  %394 = vmatpush.msra.mxu1 %v383_v8  ;;  %v430_v23 = vld [vmem:[%s1431_s5 + $0x70] sm:$0xff]  ;;  %v429_v24 = vld [vmem:[%s1431_s5 + $0x68] sm:$0xff]  ;;  %v428_v25 = vld [vmem:[%s1431_s5 + $0x60] sm:$0xff] }
  0x4e   : > { %784 = vmatpush.msra.mxu3 %v383_v8  ;;  %436 = vmatpush.msra.mxu2 %v431_v22  ;;  %v427_v26 = vld [vmem:[%s1431_s5 + $0x58] sm:$0xff]  ;;  %v426_v27 = vld [vmem:[%s1431_s5 + $0x50] sm:$0xff]  ;;  %v425_v28 = vld [vmem:[%s1431_s5 + $0x48] sm:$0xff] }
  0x4f   : > { %395 = vmatpush.msra.mxu1 %v382_v9  ;;  %v424_v29 = vld [vmem:[%s1431_s5 + $0x40] sm:$0xff]  ;;  %v423_v30 = vld [vmem:[%s1431_s5 + $0x38] sm:$0xff]  ;;  %v422_v32 = vld [vmem:[%s1431_s5 + $0x30] sm:$0xff] }
  0x50   : > { %785 = vmatpush.msra.mxu3 %v382_v9  ;;  %437 = vmatpush.msra.mxu2 %v430_v23  ;;  %v909_v31 = vld [vmem:[%s1428_s2] ss:$0 sm:$0xff]  ;;  %v421_v33 = vld [vmem:[%s1431_s5 + $0x28] sm:$0xff]  ;;  %v419_v38 = vld [vmem:[%s1431_s5 + $0x18] sm:$0xff] }
  0x51   : > { %396 = vmatpush.msra.mxu1 %v381_v10  ;;  %v420_v36 = vld [vmem:[%s1431_s5 + $0x20] sm:$0xff]  ;;  %v418_v42 = vld [vmem:[%s1431_s5 + $0x10] sm:$0xff]  ;;  %v417_v43 = vld [vmem:[%s1431_s5 + $0x8] sm:$0xff] }
  0x52   : > { %786 = vmatpush.msra.mxu3 %v381_v10  ;;  %438 = vmatpush.msra.mxu2 %v429_v24  ;;  %v416_v44 = vld [vmem:[%s1431_s5] sm:$0xff] }
  0x53   : > { %397 = vmatpush.msra.mxu1 %v380_v11  ;;  %v910_v45 = vld [vmem:[%s1430_s4] ss:$0 sm:$0xff] }
  0x54   : > { %787 = vmatpush.msra.mxu3 %v380_v11  ;;  %439 = vmatpush.msra.mxu2 %v428_v25  ;;  %v911_v52 = vld [vmem:[%s1432_s6] ss:$0 sm:$0xff] }
  0x55   : > { %757 = vmatmul.msk.f32.gmra.mxu0 %vm339_vm0, %v330_v12  ;;  %398 = vmatpush.msra.mxu1 %v379_v13 }
  0x56   : > { %788 = vmatpush.msra.mxu3 %v379_v13  ;;  %440 = vmatpush.msra.mxu2 %v427_v26 }
  0x57   : > { %399 = vmatpush.msra.mxu1 %v378_v14 }
  0x58   : > { %789 = vmatpush.msra.mxu3 %v378_v14  ;;  %441 = vmatpush.msra.mxu2 %v426_v27 }
  0x59   : > { %400 = vmatpush.msra.mxu1 %v377_v15 }
  0x5a   : > { %790 = vmatpush.msra.mxu3 %v377_v15  ;;  %442 = vmatpush.msra.mxu2 %v425_v28 }
  0x5b   : > { %401 = vmatpush.msra.mxu1 %v376_v16 }
  0x5c   : > { %791 = vmatpush.msra.mxu3 %v376_v16  ;;  %443 = vmatpush.msra.mxu2 %v424_v29 }
  0x5d   : > { %402 = vmatpush.msra.mxu1 %v375_v17 }
  0x5e   : > { %792 = vmatpush.msra.mxu3 %v375_v17  ;;  %444 = vmatpush.msra.mxu2 %v423_v30 }
  0x5f   : > { %403 = vmatpush.msra.mxu1 %v374_v18 }
  0x60   : > { %793 = vmatpush.msra.mxu3 %v374_v18  ;;  %445 = vmatpush.msra.mxu2 %v422_v32 }
  0x61   : > { %404 = vmatpush.msra.mxu1 %v373_v19 }
  0x62   : > { %794 = vmatpush.msra.mxu3 %v373_v19  ;;  %446 = vmatpush.msra.mxu2 %v421_v33 }
  0x63   : > { %405 = vmatpush.msra.mxu1 %v372_v20 }
  0x64   : > { %795 = vmatpush.msra.mxu3 %v372_v20  ;;  %447 = vmatpush.msra.mxu2 %v420_v36 }
  0x65   : > { %406 = vmatpush.msra.mxu1 %v371_v21 }
  0x66   : > { %796 = vmatpush.msra.mxu3 %v371_v21  ;;  %448 = vmatpush.msra.mxu2 %v419_v38 }
  0x68   : > { %449 = vmatpush.msra.mxu2 %v418_v42 }
  0x6a   : > { %450 = vmatpush.msra.mxu2 %v417_v43 }
  0x6c   : > { %451 = vmatpush.msra.mxu2 %v416_v44 }
  0xca   : > { %v363_v34 = vpop.f32.mrf.mxu0 }
  0xcb   : > { %v364_v35 = vadd.f32 %v909_v31, %v363_v34 }
  0xcd   : > { %v369_v37 = vmax.f32 %v364_v35, 0.0 }
  0xcf   : > { %407 = vmatmul.f32.vlgmr.msra.gmra.mxu1 %v369_v37 }
  0xd2   : > { %v366_v39 = vpop.f32.mrf.mxu0 }
  0xd3   : > { %v367_v40 = vadd.f32 %v909_v31, %v366_v39 }
  0xd5   : > { %v370_v41 = vmax.f32 %v367_v40, 0.0 }
  0xd7   : > { %410 = vmatmul.f32.vlgmr.msra.gmra.mxu3 %v370_v41 }
 0x14c   : > { %v408_v46 = vpop.f32.mrf.mxu1 }
 0x14d   : > { %v409_v47 = vadd.f32 %v910_v45, %v408_v46 }
 0x14f   : > { %v414_v48 = vmax.f32 %v409_v47, 0.0 }
 0x151   : > { %452 = vmatmul.f32.vlgmr.msra.gmra.mxu2 %v414_v48 }
 0x15a   : > { %v411_v49 = vpop.f32.mrf.mxu3 }
 0x15b   : > { %v412_v50 = vadd.f32 %v910_v45, %v411_v49 }
 0x15d   : > { %v415_v51 = vmax.f32 %v412_v50, 0.0 }
 0x15f   : > { %455 = vmatmul.f32.gmra.mxu2 %v415_v51 }
 0x1d4   : > { %v453_v53 = vpop.f32.mrf.mxu2 }
 0x1d5   : > { %v454_v54 = vadd.f32 %v911_v52, %v453_v53 }
 0x1d7   : > { %v758_v55 = vmul.f32 -1.442695, %v454_v54 }
 0x1d9   : > { %912 = vpow2.f32 %v758_v55 }
 0x1df   : > { %v913_v56 = vpop.eup %912 }
 0x1e0   : > { %v465_v57 = vadd.f32 1.0, %v913_v56 }
 0x1e2   : > { %914 = vrcp.f32 %v465_v57  ;;  %v456_v58 = vpop.f32.mrf.mxu2  ;;  %v478_v0 = vand.u32 2147483648, %v465_v57  ;;  %v476_v3 = vand.u32 2147483647, %v465_v57  ;;  %vm472_vm2 = vweird.f32 %v465_v57 }
 0x1e3   : > { %v457_v59 = vadd.f32 %v911_v52, %v456_v58 }
 0x1e4   : > { %v479_v6 = vor.u32 1.1754944e-38, %v478_v0  ;;  %vm477_vm5 = vcmp.eq.f32.partialorder %v476_v3, 8.507059e+37 }
 0x1e5   : > { %v759_v60 = vmul.f32 -1.442695, %v457_v59 }
 0x1e7   : > { %916 = vpow2.f32 %v759_v60 }
 0x1e8   : > { %v915_v61 = vpop.eup %914 }
 0x1e9   : > { %v468_v62 = vmul.f32 %v915_v61, %v465_v57  ;;  %vm473_vm1 = vweird.f32 %v915_v61 }
 0x1ea   : > { %vm474_vm3 = vmor %vm472_vm2, %vm473_vm1 }
 0x1eb   : > { %v469_v63 = vsub.f32 1.0, %v468_v62 }
 0x1ed   : > { %v917_v1 = vpop.eup %916  ;;  %v470_v2 = vmul.f32 %v915_v61, %v469_v63 }
 0x1ee   : > { %v466_v4 = vadd.f32 1.0, %v917_v1 }
 0x1ef   : > { %v471_v5 = vadd.f32 %v915_v61, %v470_v2 }
 0x1f0   : > { %918 = vrcp.f32 %v466_v4  ;;  %v493_v12 = vand.u32 2147483648, %v466_v4  ;;  %v491_v14 = vand.u32 2147483647, %v466_v4  ;;  %vm487_vm7 = vweird.f32 %v466_v4 }
 0x1f1   : > { %v475_v7 = vsel %vm474_vm3, %v915_v61, %v471_v5 }
 0x1f2   : > { %v480_v8 = vsel %vm477_vm5, %v479_v6, %v475_v7  ;;  %v494_v16 = vor.u32 1.1754944e-38, %v493_v12  ;;  %vm492_vm9 = vcmp.eq.f32.partialorder %v491_v14, 8.507059e+37 }
 0x1f3   : > { %498 = vst.msk [vmem:[%s1376_s21] sm:$0xff] %vm497_vm4, %v480_v8 }
 0x1f6   : > { %v919_v9 = vpop.eup %918 }
 0x1f7   : > { %v483_v10 = vmul.f32 %v919_v9, %v466_v4  ;;  %vm488_vm6 = vweird.f32 %v919_v9 }
 0x1f8   : > { %vm489_vm8 = vmor %vm487_vm7, %vm488_vm6 }
 0x1f9   : > { %v484_v11 = vsub.f32 1.0, %v483_v10 }
 0x1fb   : > { %v485_v13 = vmul.f32 %v919_v9, %v484_v11 }
 0x1fd   : > { %v486_v15 = vadd.f32 %v919_v9, %v485_v13  ;;  %506 = sbr.rel (!%p1187_p10) target bundleno = 553 (0x229), region = 60 }
 0x1ff   : > { %v490_v17 = vsel %vm489_vm8, %v919_v9, %v486_v15 }
 0x200   : > { %v495_v18 = vsel %vm492_vm9, %v494_v16, %v490_v17 }
 0x201   : > { %499 = vst.msk [vmem:[%s1376_s21 + $0x8] sm:$0xff] %vm497_vm4, %v495_v18 }
 0x202   : > { %s1451_s27 = smov (!%p509_p8, %s508_s27), 2 }
 0x203   : > { %s762_s16 = sshll.u32 %s1451_s27, 3 }
 0x204   : > { %p765_p11 = scmp.eq.s32.totalorder %s762_s16, 0 }
 0x205   : > { %s1395_s12 = sshrl.u32 (!%p765_p11), %s1451_s27, 1 }
 0x206   : > { %517 = sbr.rel (%p765_p11) target bundleno = 553 (0x229), region = 64  ;;  %p766_p10 = scmp.le.s32.totalorder (!%p765_p11), %s1395_s12, 0 }
 0x20b   : > { %685 = sbr.rel (%p766_p10) target bundleno = 536 (0x218), region = 146  ;;  %s1061_s28 = smov (!%p766_p10), %s1389_s14  }
 0x20c   : > { %s1065_s23 = smov (!%p766_p10), %s1376_s21   ;;  %s1069_s18 = smov (!%p766_p10), 0  }
 0x20d   : > { %s1073_s13 = smov (!%p766_p10), 0  }
 0x210 LB: >> { %v582_v19 = vld [vmem:[%s1067_s23] sm:$0xff]  ;;  %v584_v20 = vld [vmem:[%s1067_s23 + $0x8] sm:$0xff]  ;;  %s586_s24 = sadd.s32 1, %s1071_s18  ;;  %s576_s13 = sadd.s32 1, %s1075_s13   ;;  %s1075_s13 = sphi %s1073_s13, %s576_s13   ;;  %s1071_s18 = sphi %s1069_s18, %s1070_s18   ;;  %s1067_s23 = sphi %s1065_s23, %s591_s23   ;;  %s1063_s28 = sphi %s1061_s28, %s592_s28  }
 0x211   : >> { %583 = vst [vmem:[%s1063_s28] sm:$0xff] %v582_v19  ;;  %p587_p6 = scmp.ge.s32.totalorder %s586_s24, %s1395_s12  ;;  %p575_p7 = scmp.ge.s32.totalorder %s576_s13, %s1395_s12 }
 0x212   : >> { %585 = vst [vmem:[%s1063_s28 + $0x8] sm:$0xff] %v584_v20 }
 0x213   : >> { %s1453_s24 = smov (%p587_p6, %s586_s24), 0  ;;  %578 = sbr.rel (!%p575_p7) target bundleno = 528 (0x210), region = 152 }
 0x214   : >> { %s767_s15 = sshll.u32 %s1453_s24, 4  ;;  %s1070_s18 = smov %s1453_s24  }
 0x215   : >> { %s591_s23 = scalar_lea.vmem %s1376_s21, %s767_s15 [#allocation6]   ;;  %s592_s28 = scalar_lea.vmem %s1389_s14, %s767_s15  }
 0x218 PF: > { %s1405_s10 = sand.u32 1, %s1451_s27   ;;  %s779_s11 = sshll.u32 %s1395_s12, 4 }
 0x219   : > { %s597_s19 = scalar_lea.vmem %s1376_s21, %s779_s11 [#allocation6]   ;;  %s599_s22 = scalar_lea.vmem %s1389_s14, %s779_s11  }
 0x21a   : > { %p772_p9 = scmp.le.s32.totalorder %s1405_s10, 0 }
 0x21b   : > { %s1077_s30 = smov (!%p772_p9), %s599_s22   ;;  %s1081_s20 = smov (!%p772_p9), %s597_s19  }
 0x21c   : > { %699 = sbr.rel (%p772_p9) target bundleno = 553 (0x229), region = 157  ;;  %s1085_s17 = smov (!%p772_p9), 0  }
 0x21d   : > { %s1089_s8 = smov (!%p772_p9), 0  }
 0x221 LB: >> { %v609_v21 = vld [vmem:[%s1083_s20] sm:$0xff]  ;;  %s611_s27 = sadd.s32 1, %s1087_s17  ;;  %s603_s8 = sadd.s32 1, %s1091_s8   ;;  %s1091_s8 = sphi %s1089_s8, %s603_s8   ;;  %s1087_s17 = sphi %s1085_s17, %s1086_s17   ;;  %s1083_s20 = sphi %s1081_s20, %s616_s20   ;;  %s1079_s30 = sphi %s1077_s30, %s617_s30  }
 0x222   : >> { %610 = vst [vmem:[%s1079_s30] sm:$0xff] %v609_v21  ;;  %p612_p12 = scmp.ge.s32.totalorder %s611_s27, %s1405_s10  ;;  %p602_p13 = scmp.ge.s32.totalorder %s603_s8, %s1405_s10 }
 0x224   : >> { %s1455_s27 = smov (%p612_p12, %s611_s27), 0  ;;  %605 = sbr.rel (!%p602_p13) target bundleno = 545 (0x221), region = 163 }
 0x225   : >> { %s773_s21 = sshll.u32 %s1455_s27, 3  ;;  %s1086_s17 = smov %s1455_s27  }
 0x226   : >> { %s616_s20 = scalar_lea.vmem %s597_s19, %s773_s21 [#allocation6]   ;;  %s617_s30 = scalar_lea.vmem %s599_s22, %s773_s21  }
 0x229 PF: > { %p18_p0 = scmp.ge.s32.totalorder %s1161_s29, 4   ;;  %s1444_s24 = smov %s1051_s25 }
 0x22a   : > { %s1445_s25 = smov %s1055_s26  ;;  %s1446_s26 = smov %s1171_s9 }
 0x22b   : > { %s1447_s27 = smov %s1161_s29  ;;  %20 = sbr.rel (!%p18_p0) target bundleno = 4 (0x4), region = 174 }
 0x230   :  { %633 = vsyncpa [#allocation3], 1 }
 0x231   :  { %635 = vsyncpa [#allocation3 + $0x1], 1 }
 0x232   :  { %636 = vsyncpa [#allocation5], 1 }

</bundles_post_ra>
